<compile_context>
chip_gen: v7x
topology: tpu7x:2x2x1
jax: 0.10.0
libtpu: 0.0.40
codegen_flags: <defaults>
</compile_context>

<pallas_src>
import functools
import inspect

import jax
import jax.numpy as jnp
from jax import lax
from jax.experimental import pallas as pl
from jax.experimental.pallas import tpu as pltpu


def _round_up(a, m):
    return -(-a // m) * m


def _make_list(x, n):
    if x is None or isinstance(x, (int, float)):
        return [x] * n
    x = list(x)
    if len(x) < n:
        x = x + [x[-1]] * (n - len(x))
    return x[:n]


def _resolve_padding(padding, kh, kw, dh, dw):
    if padding is None or (isinstance(padding, str) and padding == 'valid'):
        return 0, 0
    if isinstance(padding, str) and padding == 'same':
        # TODO(synk): nitorch pads asymmetrically for even kernels; only the
        # symmetric (odd-kernel) case is handled here.
        return dh * (kh - 1) // 2, dw * (kw - 1) // 2
    ph, pw = _make_list(padding, 2)
    return int(ph), int(pw)


def _pad_value(dtype, reduction):
    if reduction in ('mean', 'sum'):
        return 0
    dtype = jnp.dtype(dtype)
    if jnp.issubdtype(dtype, jnp.floating):
        return -jnp.inf if reduction == 'max' else jnp.inf
    info = jnp.iinfo(dtype)
    return int(info.min if reduction == 'max' else info.max)


def _vmem_limit_bytes():
    """Generation-aware scoped-VMEM limit (v5e/v6e -> 64 MiB, v7x -> 40 MiB)."""
    try:
        phys = int(pltpu.get_tpu_info().vmem_capacity_bytes)
    except Exception:  # conservative (v7x-sized) fallback
        phys = 64 * 1024 * 1024
    return min(max(32 * 1024 * 1024, phys * 5 // 8), 64 * 1024 * 1024)


def _pick_lane_block(lanes_pad, itemsize):
    """Widest lane block (multiple of 128, divisor of lanes_pad) <= ~2 KiB rows."""
    if lanes_pad % 128:
        return lanes_pad                       # full-extent lane block
    target = max(128, min(2048, (2048 // max(1, itemsize)) // 128 * 128))
    n128 = lanes_pad // 128
    best = 128
    for m in range(1, n128 + 1):
        if n128 % m == 0 and m * 128 <= target:
            best = m * 128
    return best


def _plan_tiles(ho, sh, sw, wq, wo, qh_max, lanes_pad, itemsize, acc_itemsize,
                vmem_limit, max_tile_ho=None):
    """Choose (lane_block, tile_ho, n_ho) under a generation-aware VMEM budget."""
    target_in_block = min(12 * 1024 * 1024, vmem_limit // 5)
    budget = (vmem_limit * 3) // 4
    lane_block = _pick_lane_block(lanes_pad, itemsize)
    while True:
        in_per = sh * sw * wq * lane_block * itemsize      # input bytes / out row
        out_per = wo * lane_block * itemsize
        y_per = sh * wo * lane_block * acc_itemsize        # stage-1 intermediate
        z_per = 2 * wo * lane_block * acc_itemsize         # accumulator + temp
        per_orow = 2 * in_per + 2 * out_per + y_per + z_per
        fixed = qh_max * (2 * sh * sw * wq * lane_block * itemsize
                          + sh * wo * lane_block * acc_itemsize)   # halo block
        tile_vmem = max(0, (budget - fixed) // per_orow)
        can_shrink = (lanes_pad % 128 == 0) and lane_block > 128
        if tile_vmem >= max(1, qh_max) or not can_shrink:
            break
        lane_block = max(128, ((lane_block // 2) // 128) * 128)
        while lanes_pad % lane_block and lane_block > 128:
            lane_block -= 128
    tile_target = max(1, target_in_block // in_per)
    span = ho + qh_max                          # extra slack rows when overlapping
    tile_ho = min(span, max(1, tile_vmem), tile_target)
    if max_tile_ho is not None:
        tile_ho = min(tile_ho, max(1, int(max_tile_ho)))
    tile_ho = max(1, tile_ho)
    if qh_max:                                  # halo BlockSpec divisibility
        tile_ho = max(qh_max, (tile_ho // qh_max) * qh_max)
    n_ho = -(-span // tile_ho)
    return lane_block, tile_ho, n_ho


def _pool2d_kernel(*refs, kh, kw, sh, sw, dh, dw, tile_ho, wo, qh_max,
                   reduction):
    """Tap-wise 2-D pooling.

    refs = (x_ref[, halo_ref], o_ref)
      x_ref    : (tile_ho*sh, sw, Wq, L) VMEM ref   (phase-split W)
      halo_ref : (qh_max*sh,  sw, Wq, L) VMEM ref   (only when windows overlap)
      o_ref    : (tile_ho, Wo, L) VMEM ref
    """
    if qh_max:
        x_ref, xh_ref, o_ref = refs
    else:
        x_ref, o_ref = refs
        xh_ref = None

    if reduction == 'max':
        op, acc_dtype = jnp.maximum, None
    elif reduction == 'min':
        op, acc_dtype = jnp.minimum, None
    else:  # 'mean' / 'sum' -> accumulate (f32 for floats / mean, int32 otherwise)
        op = jnp.add
        acc_dtype = (jnp.float32
                     if (reduction == 'mean'
                         or jnp.issubdtype(x_ref.dtype, jnp.floating))
                     else jnp.int32)

    lanes = x_ref.shape[-1]

    def stage1_w(ref):
        """Combine the kw taps along W; every tap is a contiguous slice."""
        y = None
        for j in range(kw):
            qj, pj = divmod(j * dw, sw)
            tap = ref[:, pj, qj:qj + wo, :]            # (rows, wo, lanes)
            if acc_dtype is not None:
                tap = tap.astype(acc_dtype)
            y = tap if y is None else op(y, tap)
        return y

    # Stage 1: W reduction for the main block (and the small halo block).
    y = stage1_w(x_ref).reshape(tile_ho, sh, wo, lanes)
    if qh_max:
        yh = stage1_w(xh_ref).reshape(qh_max, sh, wo, lanes)
        y = jnp.concatenate([y, yh], axis=0)           # (tile_ho+qh_max, sh, wo, L)

    # Stage 2: H reduction via free major-dim slicing.
    z = None
    for i in range(kh):
        qi, pi = divmod(i * dh, sh)
        tap = y[qi:qi + tile_ho, pi]                   # (tile_ho, wo, lanes)
        z = tap if z is None else op(z, tap)

    if reduction == 'mean':
        # TODO(synk): count_include_pad=True semantics (matches avg_pool2d default)
        z = z * (1.0 / float(kh * kw))
    o_ref[...] = z.astype(o_ref.dtype)


def pool2d(x, kernel_size=3, stride=None, padding=0, dilation=1,
           reduction='max', max_tile_ho=None):
    """Strided 2-D pooling of a (B, C, H, W) tensor via a Pallas TPU kernel."""
    if reduction not in ('max', 'min', 'mean', 'sum'):
        raise NotImplementedError(f'reduction={reduction!r}')

    b, c, h0, w0 = x.shape
    out_dtype = x.dtype
    kh, kw = [int(k) for k in _make_list(kernel_size, 2)]
    sh, sw = [int(k if s is None else s)
              for s, k in zip(_make_list(stride, 2), (kh, kw))]
    dh, dw = [int(d) for d in _make_list(dilation, 2)]
    ph, pw = _resolve_padding(padding, kh, kw, dh, dw)

    h = h0 + 2 * ph
    w = w0 + 2 * pw
    # Floor-mode output shape (ceil=False).
    ho = (h - dh * (kh - 1) - 1) // sh + 1
    wo = (w - dw * (kw - 1) - 1) // sw + 1
    if ho < 1 or wo < 1:
        raise ValueError('pooling window does not fit inside the input')

    itemsize = jnp.dtype(x.dtype).itemsize
    acc_itemsize = 4 if reduction in ('mean', 'sum') else itemsize

    # W axis: phase-split into (Wq, sw).  Tap j of output column r reads
    # column r*sw + j*dw == (r + j*dw//sw)*sw + (j*dw % sw)  -> contiguous.
    qw_max = ((kw - 1) * dw) // sw
    wq = wo + qw_max
    w_pad = wq * sw

    # H axis: qh_max >= 1 iff windows overlap along H (stride < kernel extent);
    # the kernel then also reads a qh_max*sh-row halo block from the next tile.
    qh_max = ((kh - 1) * dh) // sh

    # Lane axis: fuse batch*channel; avoid padding traffic when possible.
    lanes = b * c
    if lanes % 128 == 0:
        lanes_pad = lanes
    elif lanes > 1024:
        lanes_pad = _round_up(lanes, 128)     # enable lane tiling for wide B*C
    else:
        lanes_pad = lanes                     # full-extent lane block, no pad

    vmem_limit = _vmem_limit_bytes()
    lane_block, tile_ho, n_ho = _plan_tiles(
        ho, sh, sw, wq, wo, qh_max, lanes_pad, itemsize, acc_itemsize,
        vmem_limit, max_tile_ho=max_tile_ho)
    block_rows = tile_ho * sh
    ho_pad = n_ho * tile_ho
    h_pad = ho_pad * sh
    n_l = lanes_pad // lane_block

    # --- Host-side relayout: ONE pad (boundary + alignment + lanes) + ONE
    # transpose.  Alignment/lane padding is never combined into valid outputs.
    # TODO(synk): the transpose could be removed with an in-kernel gather
    # (memory_space=pl.ANY + manual DMA) at the cost of a much more complex
    # pipeline; it is the remaining extra HBM pass.
    pad_val = _pad_value(x.dtype, reduction)
    xr = x.reshape(lanes, h0, w0)
    keep_h = min(h0, h_pad - ph)
    keep_w = min(w0, w_pad - pw)
    xr = xr[:, :keep_h, :keep_w]
    xr = jnp.pad(xr, ((0, lanes_pad - lanes),
                      (ph, h_pad - ph - keep_h),
                      (pw, w_pad - pw - keep_w)),
                 constant_values=pad_val)
    x_t = jnp.transpose(xr.reshape(lanes_pad, h_pad, wq, sw), (1, 3, 2, 0))

    kernel = functools.partial(
        _pool2d_kernel, kh=kh, kw=kw, sh=sh, sw=sw, dh=dh, dw=dw,
        tile_ho=tile_ho, wo=wo, qh_max=qh_max, reduction=reduction)

    in_specs = [pl.BlockSpec((block_rows, sw, wq, lane_block),
                             lambda hi, li: (hi, 0, 0, li))]
    operands = [x_t]
    if qh_max:
        halo_rows = qh_max * sh
        step = tile_ho // qh_max            # halo block index stride
        last = n_ho - 1                     # clamp (last tile never needs halo)
        in_specs.append(pl.BlockSpec(
            (halo_rows, sw, wq, lane_block),
            lambda hi, li: (jnp.minimum(hi + 1, last) * step, 0, 0, li)))
        operands.append(x_t)

    out_t = pl.pallas_call(
        kernel,
        out_shape=jax.ShapeDtypeStruct((ho_pad, wo, lanes_pad), out_dtype),
        grid_spec=pltpu.PrefetchScalarGridSpec(
            num_scalar_prefetch=0,
            grid=(n_ho, n_l),                      # lane tiles iterate fastest
            in_specs=in_specs,
            out_specs=pl.BlockSpec((tile_ho, wo, lane_block),
                                   lambda hi, li: (hi, 0, li)),
        ),
        compiler_params=pltpu.CompilerParams(
            dimension_semantics=("parallel", "parallel"),
            vmem_limit_bytes=int(vmem_limit)),
    )(*operands)

    out = out_t[:ho, :, :lanes]
    return jnp.transpose(out, (2, 0, 1)).reshape(b, c, ho, wo)


_ACTIVATIONS = {
    'relu': jax.nn.relu, 'tanh': jnp.tanh, 'sigmoid': jax.nn.sigmoid,
    'elu': jax.nn.elu, 'gelu': jax.nn.gelu, 'softplus': jax.nn.softplus,
}


class Pool:
    """Pallas port of nitorch Pool (generic pooling layer), forward only."""
    reduction = 'max'

    def __init__(self, dim, kernel_size=3, stride=None, padding=0,
                 dilation=1, reduction=None, activation=None,
                 return_indices=False, ceil=False):
        if dim != 2:
            # TODO(synk): only dim=2 is implemented in this port
            raise NotImplementedError('only dim=2 is implemented in this port')
        self.dim = dim
        self.kernel_size = _make_list(kernel_size, dim)
        self.stride = _make_list(stride, dim)
        self.padding = padding
        self.dilation = _make_list(dilation, dim)
        self.reduction = reduction or self.reduction
        self.return_indices = return_indices
        self.ceil = ceil
        if isinstance(activation, str):
            activation = _ACTIVATIONS.get(activation.lower(), None)
        self.activation = (activation() if inspect.isclass(activation)
                           else activation if callable(activation) else None)
        if self.reduction not in ('max', 'min', 'mean', 'sum'):
            # TODO(synk): 'median' reduction has no clean Pallas equivalent here
            raise NotImplementedError(f'reduction={self.reduction!r}')
        if return_indices:
            # TODO(synk): return_indices (argmax/argmin locations) not implemented
            raise NotImplementedError('return_indices')
        if ceil:
            # TODO(synk): ceil-mode output shape not implemented
            raise NotImplementedError('ceil')

    def shape(self, x):
        shp = tuple(x.shape) if hasattr(x, 'shape') else tuple(x)
        b, c, h, w = shp
        kh, kw = self.kernel_size
        sh, sw = [k if s is None else s
                  for s, k in zip(self.stride, self.kernel_size)]
        dh, dw = self.dilation
        ph, pw = _resolve_padding(self.padding, kh, kw, dh, dw)
        ho = (h + 2 * ph - dh * (kh - 1) - 1) // sh + 1
        wo = (w + 2 * pw - dw * (kw - 1) - 1) // sw + 1
        return (b, c, ho, wo)

    def __call__(self, x):
        out = pool2d(x, kernel_size=self.kernel_size, stride=self.stride,
                     padding=self.padding, dilation=self.dilation,
                     reduction=self.reduction)
        if self.activation is not None:
            out = self.activation(out)
        return out


if __name__ == '__main__':
    key = jax.random.PRNGKey(0)
    x = jax.random.normal(key, (2, 4, 16, 16), dtype=jnp.float32)

    def ref_pool(x, k, s, d=(1, 1), p=0, reduction='max'):
        init = {'max': -jnp.inf, 'min': jnp.inf}.get(reduction, 0.0)
        fn = {'max': lax.max, 'min': lax.min}.get(reduction, lax.add)
        pads = ((0, 0), (0, 0), (p, p), (p, p))
        out = lax.reduce_window(x, init, fn,
                                window_dimensions=(1, 1) + tuple(k),
                                window_strides=(1, 1) + tuple(s),
                                padding=pads,
                                window_dilation=(1, 1) + tuple(d))
        if reduction == 'mean':
            out = out / float(k[0] * k[1])
        return out

    def check(name, got, want, atol=0.0):
        got = jax.block_until_ready(got)
        assert got.shape == want.shape, (name, got.shape, want.shape)
        assert bool(jnp.allclose(got, want, atol=atol, rtol=0.0)), \
            (name, float(jnp.max(jnp.abs(got - want))))

    # 1) Module defaults: kernel 3, stride 3, max.
    pool = Pool(dim=2)
    assert pool.shape(x) == (2, 4, 5, 5)
    check('default-max', pool(x), ref_pool(x, (3, 3), (3, 3)))

    # 2) Overlapping windows (stride < kernel), single H block.
    check('overlap-max', Pool(dim=2, kernel_size=3, stride=2)(x),
          ref_pool(x, (3, 3), (2, 2)))

    # 3) Overlapping windows with forced multi-tile H (exercises the halo path).
    check('overlap-halo-tiles',
          pool2d(x, kernel_size=3, stride=2, reduction='max', max_tile_ho=2),
          ref_pool(x, (3, 3), (2, 2)))

    # 4) Mean pooling, kernel 2.
    check('mean', Pool(dim=2, kernel_size=2, reduction='mean')(x),
          ref_pool(x, (2, 2), (2, 2), reduction='mean'), atol=1e-5)

    # 5) Min pooling with overlap.
    check('min', Pool(dim=2, kernel_size=3, stride=2, reduction='min')(x),
          ref_pool(x, (3, 3), (2, 2), reduction='min'))

    # 6) Dilation + overlap + forced small H tiles.
    check('dilated-halo',
          pool2d(x, kernel_size=2, stride=2, dilation=2, reduction='max',
                 max_tile_ho=3),
          ref_pool(x, (2, 2), (2, 2), d=(2, 2)))

    # 7) Explicit zero padding.
    check('padded-max', Pool(dim=2, kernel_size=3, stride=3, padding=1)(x),
          ref_pool(x, (3, 3), (3, 3), p=1))

    # 8) Sum pooling + activation.
    check('sum-relu', Pool(dim=2, kernel_size=2, reduction='sum',
                           activation='relu')(x),
          jax.nn.relu(ref_pool(x, (2, 2), (2, 2), reduction='sum')), atol=1e-5)

    # 9) batch*channel not a multiple of 128 (full-extent lane block, no pad).
    x2 = jax.random.normal(jax.random.PRNGKey(1), (2, 80, 16, 16), jnp.float32)
    check('wide-lanes', Pool(dim=2)(x2), ref_pool(x2, (3, 3), (3, 3)))

    print("KERNEL_OK")
</pallas_src>

<mosaic_0001>
module attributes {stable_mosaic.version = 11 : i64} {
  func.func @_pool2d_kernel(%arg0: i32, %arg1: i32, %arg2: memref<15x3x5x8xf32, #tpu.memory_space<vmem>>, %arg3: memref<5x5x8xf32, #tpu.memory_space<vmem>>) attributes {dimension_semantics = [#tpu.dimension_semantics<parallel>, #tpu.dimension_semantics<parallel>], iteration_bounds = array<i64: 1, 1>, scalar_prefetch = 0 : i64, scratch_operands = 0 : i64, tpu.core_type = #tpu.core_type<tc>, window_params = [{transform_indices = @transform_0, window_bounds = array<i64: 15, 3, 5, 8>}, {transform_indices = @transform_1, window_bounds = array<i64: 5, 5, 8>}]} {
    %c0 = arith.constant 0 : index
    %c0_0 = arith.constant 0 : index
    %c0_1 = arith.constant 0 : index
    %c0_2 = arith.constant 0 : index
    %0 = vector.load %arg2[%c0, %c0_0, %c0_1, %c0_2] : memref<15x3x5x8xf32, #tpu.memory_space<vmem>>, vector<15x1x5x8xf32>
    %1 = vector.shape_cast %0 : vector<15x1x5x8xf32> to vector<15x5x8xf32>
    %c0_3 = arith.constant 0 : index
    %c1 = arith.constant 1 : index
    %c0_4 = arith.constant 0 : index
    %c0_5 = arith.constant 0 : index
    %2 = vector.load %arg2[%c0_3, %c1, %c0_4, %c0_5] : memref<15x3x5x8xf32, #tpu.memory_space<vmem>>, vector<15x1x5x8xf32>
    %3 = vector.shape_cast %2 : vector<15x1x5x8xf32> to vector<15x5x8xf32>
    %4 = arith.maximumf %1, %3 : vector<15x5x8xf32>
    %c0_6 = arith.constant 0 : index
    %c2 = arith.constant 2 : index
    %c0_7 = arith.constant 0 : index
    %c0_8 = arith.constant 0 : index
    %5 = vector.load %arg2[%c0_6, %c2, %c0_7, %c0_8] : memref<15x3x5x8xf32, #tpu.memory_space<vmem>>, vector<15x1x5x8xf32>
    %6 = vector.shape_cast %5 : vector<15x1x5x8xf32> to vector<15x5x8xf32>
    %7 = arith.maximumf %4, %6 : vector<15x5x8xf32>
    %8 = vector.shape_cast %7 : vector<15x5x8xf32> to vector<5x3x5x8xf32>
    %9 = vector.extract_strided_slice %8 {offsets = [0, 0, 0, 0], sizes = [5, 1, 5, 8], strides = [1, 1, 1, 1]} : vector<5x3x5x8xf32> to vector<5x1x5x8xf32>
    %10 = vector.shape_cast %9 : vector<5x1x5x8xf32> to vector<5x5x8xf32>
    %11 = vector.extract_strided_slice %8 {offsets = [0, 1, 0, 0], sizes = [5, 1, 5, 8], strides = [1, 1, 1, 1]} : vector<5x3x5x8xf32> to vector<5x1x5x8xf32>
    %12 = vector.shape_cast %11 : vector<5x1x5x8xf32> to vector<5x5x8xf32>
    %13 = arith.maximumf %10, %12 : vector<5x5x8xf32>
    %14 = vector.extract_strided_slice %8 {offsets = [0, 2, 0, 0], sizes = [5, 1, 5, 8], strides = [1, 1, 1, 1]} : vector<5x3x5x8xf32> to vector<5x1x5x8xf32>
    %15 = vector.shape_cast %14 : vector<5x1x5x8xf32> to vector<5x5x8xf32>
    %16 = arith.maximumf %13, %15 : vector<5x5x8xf32>
    %c0_9 = arith.constant 0 : index
    %c0_10 = arith.constant 0 : index
    %c0_11 = arith.constant 0 : index
    %17 = vector.load %arg3[%c0_9, %c0_10, %c0_11] : memref<5x5x8xf32, #tpu.memory_space<vmem>>, vector<5x5x8xf32>
    tpu.vector_store %arg3[%c0_9, %c0_10, %c0_11], %16 {strides = array<i32>} : memref<5x5x8xf32, #tpu.memory_space<vmem>>, vector<5x5x8xf32>,
    return
  }
  func.func @transform_0(%arg0: i32, %arg1: i32) -> (i32, i32, i32, i32) {
    %c0_i32 = arith.constant 0 : i32
    %c0_i32_0 = arith.constant 0 : i32
    %c0_i32_1 = arith.constant 0 : i32
    return %arg0, %c0_i32, %c0_i32_0, %arg1 : i32, i32, i32, i32
  }
  func.func @transform_1(%arg0: i32, %arg1: i32) -> (i32, i32, i32) {
    %c0_i32 = arith.constant 0 : i32
    %c0_i32_0 = arith.constant 0 : i32
    return %arg0, %c0_i32, %arg1 : i32, i32, i32
  }
}

</mosaic_0001>

<bundles_post_ra>
// kernel: tpu_custom_call.1
= control target key start
LH: loop header
LB: loop body
LE: loop exit
PB: predicated region body
PF: predicated region fallthrough
CT: control target
= control target key end

     0   :  { %vm96_vm0 = vcmask 61440   ;;  %s340_s0 = inlined_call_operand.vmem [shape: f32[15,3,5,8], index: 0, kind: input, shape index: {}]   ;;  %s341_s1 = inlined_call_operand.hbm [shape: f32[5,5,8], index: 1, kind: output, shape index: {}]  }
   0x1   :  { %v9_v0 = vld [vmem:[%s340_s0] sm:$0x1f]  ;;  %v10_v1 = vld [vmem:[%s340_s0 + $0x18] sm:$0x1f]  ;;  %v11_v2 = vld [vmem:[%s340_s0 + $0x30] sm:$0x1f] }
   0x2   :  { %v118_v3 = vld [vmem:[%s340_s0 + $0x8] sm:$0x1f]  ;;  %v119_v4 = vld [vmem:[%s340_s0 + $0x20] sm:$0x1f]  ;;  %v120_v5 = vld [vmem:[%s340_s0 + $0x38] sm:$0x1f] }
   0x3   :  { %v40_v6 = vmax.f32 %v9_v0, %v118_v3  ;;  %v41_v7 = vmax.f32 %v10_v1, %v119_v4  ;;  %v42_v8 = vmax.f32 %v11_v2, %v120_v5  ;;  %v133_v9 = vld [vmem:[%s340_s0 + $0x10] sm:$0x1f]  ;;  %v134_v10 = vld [vmem:[%s340_s0 + $0x28] sm:$0x1f]  ;;  %v135_v11 = vld [vmem:[%s340_s0 + $0x40] sm:$0x1f] }
   0x4   :  { %v12_v12 = vld [vmem:[%s340_s0 + $0x48] sm:$0x1f]  ;;  %v13_v13 = vld [vmem:[%s340_s0 + $0x60] sm:$0x1f]  ;;  %v14_v17 = vld [vmem:[%s340_s0 + $0x78] sm:$0x1f] }
   0x5   :  { %v71_v14 = vmax.f32 %v40_v6, %v133_v9  ;;  %v72_v15 = vmax.f32 %v41_v7, %v134_v10  ;;  %v73_v16 = vmax.f32 %v42_v8, %v135_v11  ;;  %v121_v18 = vld [vmem:[%s340_s0 + $0x50] sm:$0x1f]  ;;  %v122_v19 = vld [vmem:[%s340_s0 + $0x68] sm:$0x1f]  ;;  %v123_v20 = vld [vmem:[%s340_s0 + $0x80] sm:$0x1f] }
   0x6   :  { %v43_v21 = vmax.f32 %v12_v12, %v121_v18  ;;  %v44_v22 = vmax.f32 %v13_v13, %v122_v19  ;;  %v136_v23 = vld [vmem:[%s340_s0 + $0x58] sm:$0x1f]  ;;  %v137_v24 = vld [vmem:[%s340_s0 + $0x70] sm:$0x1f]  ;;  %v45_v26 = vmax.f32 %v14_v17, %v123_v20  ;;  %v138_v27 = vld [vmem:[%s340_s0 + $0x88] sm:$0x1f] }
   0x7   :  { %v86_v25 = vmax.f32 %v71_v14, %v72_v15  ;;  %v15_v28 = vld [vmem:[%s340_s0 + $0x90] sm:$0x1f]  ;;  %v16_v29 = vld [vmem:[%s340_s0 + $0xa8] sm:$0x1f]  ;;  %v17_v32 = vld [vmem:[%s340_s0 + $0xc0] sm:$0x1f] }
   0x8   :  { %v74_v30 = vmax.f32 %v43_v21, %v136_v23  ;;  %v75_v31 = vmax.f32 %v44_v22, %v137_v24  ;;  %v124_v33 = vld [vmem:[%s340_s0 + $0x98] sm:$0x1f]  ;;  %v125_v34 = vld [vmem:[%s340_s0 + $0xb0] sm:$0x1f]  ;;  %v76_v36 = vmax.f32 %v45_v26, %v138_v27  ;;  %v126_v37 = vld [vmem:[%s340_s0 + $0xc8] sm:$0x1f] }
   0x9   :  { %v91_v35 = vmax.f32 %v86_v25, %v73_v16  ;;  %v46_v38 = vmax.f32 %v15_v28, %v124_v33  ;;  %v47_v39 = vmax.f32 %v16_v29, %v125_v34  ;;  %v139_v40 = vld [vmem:[%s340_s0 + $0xa0] sm:$0x1f]  ;;  %v140_v41 = vld [vmem:[%s340_s0 + $0xb8] sm:$0x1f]  ;;  %v48_v43 = vmax.f32 %v17_v32, %v126_v37  ;;  %v141_v44 = vld [vmem:[%s340_s0 + $0xd0] sm:$0x1f] }
   0xa   :  { %v87_v42 = vmax.f32 %v74_v30, %v75_v31  ;;  %v18_v45 = vld [vmem:[%s340_s0 + $0xd8] sm:$0x1f]  ;;  %v19_v46 = vld [vmem:[%s340_s0 + $0xf0] sm:$0x1f]  ;;  %v20_v49 = vld [vmem:[%s340_s0 + $0x108] sm:$0x1f] }
   0xb   :  { %97 = vst.msk [vmem:[#allocation2] sm:$0x1f] %vm96_vm0, %v91_v35  ;;  %v77_v47 = vmax.f32 %v46_v38, %v139_v40  ;;  %v78_v48 = vmax.f32 %v47_v39, %v140_v41  ;;  %v127_v50 = vld [vmem:[%s340_s0 + $0xe0] sm:$0x1f]  ;;  %v128_v51 = vld [vmem:[%s340_s0 + $0xf8] sm:$0x1f]  ;;  %v79_v53 = vmax.f32 %v48_v43, %v141_v44 }
   0xc   :  { %v92_v52 = vmax.f32 %v87_v42, %v76_v36  ;;  %v129_v54 = vld [vmem:[%s340_s0 + $0x110] sm:$0x1f]  ;;  %v49_v55 = vmax.f32 %v18_v45, %v127_v50  ;;  %v50_v56 = vmax.f32 %v19_v46, %v128_v51  ;;  %v142_v57 = vld [vmem:[%s340_s0 + $0xe8] sm:$0x1f]  ;;  %v143_v58 = vld [vmem:[%s340_s0 + $0x100] sm:$0x1f] }
   0xd   :  { %v88_v59 = vmax.f32 %v77_v47, %v78_v48  ;;  %v51_v60 = vmax.f32 %v20_v49, %v129_v54  ;;  %v144_v61 = vld [vmem:[%s340_s0 + $0x118] sm:$0x1f]  ;;  %v21_v62 = vld [vmem:[%s340_s0 + $0x120] sm:$0x1f]  ;;  %v23_v2 = vld [vmem:[%s340_s0 + $0x150] sm:$0x1f] }
   0xe   :  { %v22_v63 = vld [vmem:[%s340_s0 + $0x138] sm:$0x1f]  ;;  %98 = vst.msk [vmem:[#allocation2 + $0x8] sm:$0x1f] %vm96_vm0, %v92_v52  ;;  %v80_v0 = vmax.f32 %v49_v55, %v142_v57  ;;  %v81_v1 = vmax.f32 %v50_v56, %v143_v58  ;;  %v130_v3 = vld [vmem:[%s340_s0 + $0x128] sm:$0x1f] }
   0xf   :  { %v131_v4 = vld [vmem:[%s340_s0 + $0x140] sm:$0x1f]  ;;  %v93_v5 = vmax.f32 %v88_v59, %v79_v53  ;;  %v82_v6 = vmax.f32 %v51_v60, %v144_v61  ;;  %v132_v7 = vld [vmem:[%s340_s0 + $0x158] sm:$0x1f]  ;;  %v52_v8 = vmax.f32 %v21_v62, %v130_v3  ;;  %v145_v10 = vld [vmem:[%s340_s0 + $0x130] sm:$0x1f] }
  0x10   :  { %v53_v9 = vmax.f32 %v22_v63, %v131_v4  ;;  %v146_v11 = vld [vmem:[%s340_s0 + $0x148] sm:$0x1f]  ;;  %v89_v12 = vmax.f32 %v80_v0, %v81_v1  ;;  %v54_v13 = vmax.f32 %v23_v2, %v132_v7  ;;  %v147_v14 = vld [vmem:[%s340_s0 + $0x160] sm:$0x1f] }
  0x11   :  { %6 = vsyncpa [#allocation3], 0  ;;  %99 = vst.msk [vmem:[#allocation2 + $0x10] sm:$0x1f] %vm96_vm0, %v93_v5  ;;  %v83_v15 = vmax.f32 %v52_v8, %v145_v10  ;;  %s175_s9 = smov [#allocation2]  }
  0x12   :  { %v84_v16 = vmax.f32 %v53_v9, %v146_v11  ;;  %v94_v17 = vmax.f32 %v89_v12, %v82_v6  ;;  %v85_v18 = vmax.f32 %v54_v13, %v147_v14  ;;  %s107_s10 = sshll.u32 %s175_s9, 4  ;;  %s108_s10 = int_to_ptr.vmem [resolvable:$true] %s107_s10 }
  0x13   :  { %s151_s11 = scalar_lea.vmem %s108_s10, 640  ;;  %p156_p1 = scmp.lt.s32.totalorder %s108_s10, %s108_s10 }
  0x14   :  { %v90_v19 = vmax.f32 %v83_v15, %v84_v16  ;;  %100 = vst.msk [vmem:[#allocation2 + $0x18] sm:$0x1f] %vm96_vm0, %v94_v17  ;;  %p152_p0 = scmp.ne.s32.totalorder %s108_s10, %s151_s11  ;;  %p157_p2 = scmp.lt.s32.totalorder %s151_s11, %s151_s11 }
  0x16   :  { %v95_v20 = vmax.f32 %v90_v19, %v85_v18  ;;  %p158_p3 = por %p157_p2, %p156_p1 }
  0x18   :  { %101 = vst.msk [vmem:[#allocation2 + $0x20] sm:$0x1f] %vm96_vm0, %v95_v20  ;;  %p159_p4 = pnand %p158_p3, %p152_p0 }
  0x1a   :  { %162 = shalt.err (!%p159_p4)
}
  0x1b   :  { %s163_s13 = scalar_lea.hbm %s341_s1, 640 }
  0x1c   :  { %p164_p5 = scmp.ne.s32.totalorder %s341_s1, %s163_s13  ;;  %p167_p6 = scmp.lt.u32.totalorder %s163_s13, %s341_s1 }
  0x1e   :  { %p169_p7 = pnand %p167_p6, %p164_p5 }
  0x20   :  { %172 = shalt.err (!%p169_p7)
}
  0x21   :  { %s176_s18 = smov 128   ;;  %s177_s19 = smov 8  }
  0x22   :  { %113 = dma.vmem_to_hbm [thread:$0]  %s108_s10, 640, %s341_s1, [#allocation3], %s176_s18, %s176_s18, %s177_s19  }
  0x23   :  { %173 = dma.done.wait [#allocation3], 640  }
  0x24   :  { %174 = vsyncadd [#allocation3], 4294966656 }
  0x25   :  { %117 = vsyncpa [#allocation3], 1 }

</bundles_post_ra>
